<compile_context>
chip_gen: v7x
topology: tpu7x:2x2x1
jax: 0.10.0
libtpu: 0.0.40
codegen_flags: <defaults>
</compile_context>

<pallas_src>
import jax
import jax.numpy as jnp
from jax.experimental import pallas as pl
from jax.experimental.pallas import tpu as pltpu


def _round_up(v, m):
    return -(-v // m) * m


def _fused_conv_kernel(x_ref, w_ref, b_ref, s_ref, o_ref):
    # x_ref: (1, MP, FP)   flattened (n, c, h) rows, zero-padded features
    # w_ref: (1, FP, KP)   transposed, zero-padded weights
    # b_ref: (1, 1,  KP)   zero-padded bias
    # s_ref: (1, NCP, MP)  pooling selector: 1/(H*K) where row m is in group (n,c)
    # o_ref: (1, NCP, KP)  pooled result replicated across lanes (lane-dense store)
    y = jnp.dot(x_ref[0], w_ref[0], preferred_element_type=jnp.float32)   # (MP, KP)
    y = jnp.maximum(y + b_ref[0], 0.0)                                    # 2-D row bcast
    z = jnp.dot(s_ref[0], y, preferred_element_type=jnp.float32)          # (NCP, KP)
    ones_k = jnp.ones((z.shape[1], o_ref.shape[2]), jnp.float32)
    # Lane (K) reduction on the otherwise-idle MXU; every output lane = pooled value.
    o_ref[0] = jnp.dot(z, ones_k, preferred_element_type=jnp.float32)


def model_forward(params, x1, x2, x3):
    """All three ConvLayer blocks in one fused Pallas kernel; outputs are
    concatenated along dim 0 like torch.cat([v1, v2, v3])."""
    # TODO(synk): the reference Model chains v2 = conv2(conv1(x)) etc., but that
    # chain is shape-inconsistent in the original PyTorch (conv2's Linear expects
    # 60 features while conv1's pooled output has last dim 1) and cannot execute;
    # each block therefore runs on its own shape-compatible input here.
    xs = (x1, x2, x3)
    wbs = (params["conv1"], params["conv2"], params["conv3"])

    N, C, H = x1.shape[:3]
    for x in xs:
        assert x.shape[:3] == (N, C, H)

    NC = N * C
    M = NC * H
    MP = _round_up(M, 8)
    NCP = _round_up(NC, 8)
    FP = _round_up(max(x.shape[-1] for x in xs), 128)        # 150 -> 256
    KP = _round_up(max(w.shape[0] for (w, _) in wbs), 128)   # 75  -> 128

    def pad2(a, rows, cols):
        return jnp.pad(a, ((0, rows - a.shape[0]), (0, cols - a.shape[1])))

    # Pack inputs / params into block-indexed, (8,128)-aligned tensors.
    xp = jnp.stack([pad2(x.reshape(M, x.shape[-1]).astype(jnp.float32), MP, FP)
                    for x in xs])                                             # (3, MP, FP)
    wp = jnp.stack([pad2(w.T.astype(jnp.float32), FP, KP) for (w, _) in wbs])  # (3, FP, KP)
    bp = jnp.stack([jnp.pad(b.astype(jnp.float32), (0, KP - b.shape[0]))[None, :]
                    for (_, b) in wbs])                                        # (3, 1, KP)

    # Pooling selector matrix: s[g, m] = 1/(H*K_block) iff row m belongs to group g.
    g = jnp.arange(NCP)[:, None]
    m = jnp.arange(MP)[None, :]
    sel = (((m // H) == g) & (m < M) & (g < NC)).astype(jnp.float32)
    sp = jnp.stack([sel / float(H * w.shape[0]) for (w, _) in wbs])            # (3, NCP, MP)

    out = pl.pallas_call(
        _fused_conv_kernel,
        out_shape=jax.ShapeDtypeStruct((3, NCP, KP), jnp.float32),
        grid=(3,),
        in_specs=[
            pl.BlockSpec((1, MP, FP), lambda i: (i, 0, 0)),
            pl.BlockSpec((1, FP, KP), lambda i: (i, 0, 0)),
            pl.BlockSpec((1, 1, KP), lambda i: (i, 0, 0)),
            pl.BlockSpec((1, NCP, MP), lambda i: (i, 0, 0)),
        ],
        out_specs=pl.BlockSpec((1, NCP, KP), lambda i: (i, 0, 0)),
        compiler_params=pltpu.CompilerParams(
            dimension_semantics=("parallel",)),   # 3 blocks shard over v7x's 2 TCs
    )(xp, wp, bp, sp)

    pooled = out[:, :NC, 0]                        # every lane identical; take lane 0
    return pooled.reshape(3 * N, C)[:, :, None, None].astype(x1.dtype)  # (3N, C, 1, 1)


def _init_linear(key, in_features, out_features, dtype=jnp.float32):
    # matches torch.nn.Linear default init: U(-1/sqrt(fan_in), 1/sqrt(fan_in))
    kw, kb = jax.random.split(key)
    bound = 1.0 / float(in_features) ** 0.5
    w = jax.random.uniform(kw, (out_features, in_features), dtype, -bound, bound)
    b = jax.random.uniform(kb, (out_features,), dtype, -bound, bound)
    return w, b


def init_model_params(key):
    k1, k2, k3 = jax.random.split(key, 3)
    return {
        "conv1": _init_linear(k1, 2 * 75, 75),   # Linear(150, 75)
        "conv2": _init_linear(k2, 2 * 30, 30),   # Linear(60, 30)
        "conv3": _init_linear(k3, 2 * 40, 40),   # Linear(80, 40)
    }


def _ref_block(x, w, b):
    y = jnp.maximum(jnp.einsum("nchf,kf->nchk", x, w) + b, 0.0)
    return jnp.mean(y, axis=(2, 3), keepdims=True)


if __name__ == "__main__":
    key = jax.random.PRNGKey(0)
    kp, kx1, kx2, kx3 = jax.random.split(key, 4)
    params = init_model_params(kp)

    N, C, H = 2, 4, 8
    x1 = jax.random.normal(kx1, (N, C, H, 150), jnp.float32)
    x2 = jax.random.normal(kx2, (N, C, H, 60), jnp.float32)
    x3 = jax.random.normal(kx3, (N, C, H, 80), jnp.float32)

    fwd = jax.jit(model_forward)
    out = fwd(params, x1, x2, x3)
    out = jax.block_until_ready(out)

    ref = jnp.concatenate([
        _ref_block(x1, *params["conv1"]),
        _ref_block(x2, *params["conv2"]),
        _ref_block(x3, *params["conv3"]),
    ], axis=0)

    assert out.shape == (3 * N, C, 1, 1), out.shape
    assert jnp.allclose(out, ref, atol=1e-5, rtol=1e-5)
    print("KERNEL_OK")
</pallas_src>

<mosaic_0001>
module attributes {stable_mosaic.version = 11 : i64} {
  func.func @_fused_conv_kernel(%arg0: i32, %arg1: memref<1x64x256xf32, #tpu.memory_space<vmem>>, %arg2: memref<1x256x128xf32, #tpu.memory_space<vmem>>, %arg3: memref<1x1x128xf32, #tpu.memory_space<vmem>>, %arg4: memref<1x8x64xf32, #tpu.memory_space<vmem>>, %arg5: memref<1x8x128xf32, #tpu.memory_space<vmem>>) attributes {dimension_semantics = [#tpu.dimension_semantics<parallel>], iteration_bounds = array<i64: 3>, scalar_prefetch = 0 : i64, scratch_operands = 0 : i64, tpu.core_type = #tpu.core_type<tc>, window_params = [{transform_indices = @transform_0, window_bounds = array<i64: 1, 64, 256>}, {transform_indices = @transform_1, window_bounds = array<i64: 1, 256, 128>}, {transform_indices = @transform_2, window_bounds = array<i64: 1, 1, 128>}, {transform_indices = @transform_3, window_bounds = array<i64: 1, 8, 64>}, {transform_indices = @transform_4, window_bounds = array<i64: 1, 8, 128>}]} {
    %c0 = arith.constant 0 : index
    %c0_0 = arith.constant 0 : index
    %c0_1 = arith.constant 0 : index
    %0 = vector.load %arg1[%c0, %c0_0, %c0_1] : memref<1x64x256xf32, #tpu.memory_space<vmem>>, vector<1x64x256xf32>
    %1 = vector.shape_cast %0 : vector<1x64x256xf32> to vector<64x256xf32>
    %c0_2 = arith.constant 0 : index
    %c0_3 = arith.constant 0 : index
    %c0_4 = arith.constant 0 : index
    %2 = vector.load %arg2[%c0_2, %c0_3, %c0_4] : memref<1x256x128xf32, #tpu.memory_space<vmem>>, vector<1x256x128xf32>
    %3 = vector.shape_cast %2 : vector<1x256x128xf32> to vector<256x128xf32>
    %cst = arith.constant dense<0.000000e+00> : vector<64x128xf32>
    %4 = tpu.matmul %1, %3, %cst {dimension_numbers = #tpu.dot_dimension_numbers<[1], [0], [0], [1], [0, 0, 1, 1], [], []>} : vector<64x256xf32>, vector<256x128xf32>, vector<64x128xf32> -> vector<64x128xf32>
    %c0_5 = arith.constant 0 : index
    %c0_6 = arith.constant 0 : index
    %c0_7 = arith.constant 0 : index
    %5 = vector.load %arg3[%c0_5, %c0_6, %c0_7] : memref<1x1x128xf32, #tpu.memory_space<vmem>>, vector<1x1x128xf32>
    %6 = vector.shape_cast %5 : vector<1x1x128xf32> to vector<1x128xf32>
    %7 = vector.broadcast %6 : vector<1x128xf32> to vector<64x128xf32>
    %8 = arith.addf %4, %7 : vector<64x128xf32>
    %cst_8 = arith.constant 0.000000e+00 : f32
    %9 = vector.broadcast %cst_8 : f32 to vector<64x128xf32>
    %10 = arith.maximumf %8, %9 : vector<64x128xf32>
    %c0_9 = arith.constant 0 : index
    %c0_10 = arith.constant 0 : index
    %c0_11 = arith.constant 0 : index
    %11 = vector.load %arg4[%c0_9, %c0_10, %c0_11] : memref<1x8x64xf32, #tpu.memory_space<vmem>>, vector<1x8x64xf32>
    %12 = vector.shape_cast %11 : vector<1x8x64xf32> to vector<8x64xf32>
    %cst_12 = arith.constant dense<0.000000e+00> : vector<8x128xf32>
    %13 = tpu.matmul %12, %10, %cst_12 {dimension_numbers = #tpu.dot_dimension_numbers<[1], [0], [0], [1], [0, 0, 1, 1], [], []>} : vector<8x64xf32>, vector<64x128xf32>, vector<8x128xf32> -> vector<8x128xf32>
    %cst_13 = arith.constant 1.000000e+00 : f32
    %14 = vector.broadcast %cst_13 : f32 to vector<128x128xf32>
    %cst_14 = arith.constant dense<0.000000e+00> : vector<8x128xf32>
    %15 = tpu.matmul %13, %14, %cst_14 {dimension_numbers = #tpu.dot_dimension_numbers<[1], [0], [0], [1], [0, 0, 1, 1], [], []>} : vector<8x128xf32>, vector<128x128xf32>, vector<8x128xf32> -> vector<8x128xf32>
    %c0_15 = arith.constant 0 : index
    %c0_16 = arith.constant 0 : index
    %c0_17 = arith.constant 0 : index
    %16 = vector.load %arg5[%c0_15, %c0_16, %c0_17] : memref<1x8x128xf32, #tpu.memory_space<vmem>>, vector<1x8x128xf32>
    %17 = vector.shape_cast %16 : vector<1x8x128xf32> to vector<8x128xf32>
    %18 = vector.shape_cast %15 : vector<8x128xf32> to vector<1x8x128xf32>
    tpu.vector_store %arg5[%c0_15, %c0_16, %c0_17], %18 {strides = array<i32>} : memref<1x8x128xf32, #tpu.memory_space<vmem>>, vector<1x8x128xf32>,
    return
  }
  func.func @transform_0(%arg0: i32) -> (i32, i32, i32) {
    %c0_i32 = arith.constant 0 : i32
    %c0_i32_0 = arith.constant 0 : i32
    %c0_i32_1 = arith.constant 0 : i32
    return %arg0, %c0_i32, %c0_i32_0 : i32, i32, i32
  }
  func.func @transform_1(%arg0: i32) -> (i32, i32, i32) {
    %c0_i32 = arith.constant 0 : i32
    %c0_i32_0 = arith.constant 0 : i32
    %c0_i32_1 = arith.constant 0 : i32
    return %arg0, %c0_i32, %c0_i32_0 : i32, i32, i32
  }
  func.func @transform_2(%arg0: i32) -> (i32, i32, i32) {
    %c0_i32 = arith.constant 0 : i32
    %c0_i32_0 = arith.constant 0 : i32
    %c0_i32_1 = arith.constant 0 : i32
    return %arg0, %c0_i32, %c0_i32_0 : i32, i32, i32
  }
  func.func @transform_3(%arg0: i32) -> (i32, i32, i32) {
    %c0_i32 = arith.constant 0 : i32
    %c0_i32_0 = arith.constant 0 : i32
    %c0_i32_1 = arith.constant 0 : i32
    return %arg0, %c0_i32, %c0_i32_0 : i32, i32, i32
  }
  func.func @transform_4(%arg0: i32) -> (i32, i32, i32) {
    %c0_i32 = arith.constant 0 : i32
    %c0_i32_0 = arith.constant 0 : i32
    %c0_i32_1 = arith.constant 0 : i32
    return %arg0, %c0_i32, %c0_i32_0 : i32, i32, i32
  }
}

</mosaic_0001>

<bundles_post_ra>
// kernel: squeeze.1
= control target key start
LH: loop header
LB: loop body
LE: loop exit
PB: predicated region body
PF: predicated region fallthrough
CT: control target
= control target key end

     0   :  { %vm7_vm0 = vcmask 31744   ;;  %s37_s0 = inlined_call_operand.vmem [shape: f32[3,8], index: 0, kind: input, shape index: {}]   ;;  %s38_s1 = inlined_call_operand.vmem [shape: f32[6,4,1,1], index: 1, kind: output, shape index: {}]  }
   0x1   :  { %v4_v0 = vld [vmem:[%s37_s0] sm:$0xf]  ;;  %s17_s0 = smov 124  }
   0x2   :  { %5 = vst [vmem:[#allocation0] sm:$0xf] %v4_v0 }
   0x9   :  { %v9_v1 = vld [vmem:[#allocation0] sm:$0x7]  }
   0xa   :  { %v6_v2 = vld [vmem:[#allocation0] sm:$0x7]   ;;  %10 = vrot.lane.b32.xlu0 %v9_v1, %s17_s0 }
   0xb   :  { %8 = vst.msk [vmem:[%s38_s1] ss:$2 sm:$0x7] %vm7_vm0, %v6_v2  }
  0x7c   :  { %v11_v3 = vpop.permute.xlu0 %10  }
  0x7d   :  { %15 = vst.msk [vmem:[%s38_s1 + $0x1] ss:$2 sm:$0x7] %vm7_vm0, %v11_v3  }

// kernel: model_forward.1
= control target key start
LH: loop header
LB: loop body
LE: loop exit
PB: predicated region body
PF: predicated region fallthrough
CT: control target
= control target key end

     0   :  { %s909_s15 = smov 0   ;;  %s1013_s0 = inlined_call_operand.vmem [shape: f32[3,64,256], index: 0, kind: input, shape index: {}]   ;;  %s1014_s1 = inlined_call_operand.vmem [shape: f32[3,256,128], index: 1, kind: input, shape index: {}]   ;;  %s1015_s2 = inlined_call_operand.vmem [shape: f32[3,1,128], index: 2, kind: input, shape index: {}]   ;;  %s1016_s3 = inlined_call_operand.vmem [shape: f32[3,8,64], index: 3, kind: input, shape index: {}]   ;;  %s1017_s4 = inlined_call_operand.vmem [shape: f32[3,8,128], index: 4, kind: output, shape index: {}]  }
   0x1 LB: > { %s647_s16 = sadd.s32 4294967295, %s878_s15   ;;  %p651_p0 = scmp.ge.s32.totalorder %s878_s15, 1  ;;  %s878_s15 = sphi %s909_s15, %s14_s15  }
   0x2   : > { %p189_p1 = scmp.lt.s32.totalorder %s878_s15, 4 }
   0x4   : > { %p190_p2 = pnand %p651_p0, %p189_p1 }
   0x5   : > { %p226_p3 = scmp.lt.s32.totalorder (!%p190_p2), %s647_s16, 2  ;;  %vm881_vm0 = vmmov (!%p190_p2), 0   ;;  %vm416_vm1 = vcmask (!%p190_p2), 523264  }
   0x6   : > { %193 = sbr.rel (%p190_p2) target bundleno = 728 (0x2d8), region = 36 }
   0xd   : > { %s1019_s16 = smov (!%p226_p3, %s647_s16), 2 }
   0xe   : > { %s663_s17 = sshll.u32 %s1019_s16, 8  ;;  %s662_s21 = sshll.u32 %s1019_s16, 7 }
   0xf   : > { %s923_s20 = scalar_lea.vmem %s1014_s1, %s663_s17  ;;  %s943_s24 = scalar_lea.vmem %s1013_s0, %s662_s21 }
  0x10   : > { %v279_v0 = vld [vmem:[%s923_s20 + $0x80] sm:$0xff]  ;;  %v280_v1 = vld [vmem:[%s923_s20 + $0x88] sm:$0xff]  ;;  %v281_v5 = vld [vmem:[%s923_s20 + $0x90] sm:$0xff]  ;;  %s238_s27 = scalar_lea.vmem %s1015_s2, %s1019_s16  ;;  %s656_s28 = sshll.u32 %s1019_s16, 3 }
  0x11   : > { %v263_v2 = vld [vmem:[%s923_s20] sm:$0xff]  ;;  %v800_v3 = vpack.c.bf16 %v280_v1, %v279_v0  ;;  %v264_v4 = vld [vmem:[%s923_s20 + $0x8] sm:$0xff]  ;;  %v282_v6 = vld [vmem:[%s923_s20 + $0x98] sm:$0xff]  ;;  %v880_v0 = vmov 0.0|0.0   ;;  %v882_v1 = vmov 0.0   ;;  %s242_s5 = scalar_lea.vmem %s1016_s3, %s656_s28  ;;  %s246_s8 = scalar_lea.vmem %s1017_s4, %s656_s28 }
  0x12   : > { %v802_v7 = vpack.c.bf16 %v264_v4, %v263_v2  ;;  %v804_v8 = vpack.c.bf16 %v282_v6, %v281_v5  ;;  %v265_v9 = vld [vmem:[%s923_s20 + $0x10] sm:$0xff]  ;;  %v266_v10 = vld [vmem:[%s923_s20 + $0x18] sm:$0xff]  ;;  %v283_v11 = vld [vmem:[%s923_s20 + $0xa0] sm:$0xff]  ;;  %832 = vmatprep.subr.bf16.mxu1 %v880_v0  ;;  %762 = vmatprep.mubr.msk.f32.mxu1 %vm881_vm0, %v882_v1 }
  0x13   : > { %801 = vmatprep.subr.bf16.mxu0 %v800_v3  ;;  %v284_v12 = vld [vmem:[%s923_s20 + $0xa8] sm:$0xff]  ;;  %v806_v13 = vpack.c.bf16 %v266_v10, %v265_v9  ;;  %v267_v15 = vld [vmem:[%s923_s20 + $0x20] sm:$0xff]  ;;  %v285_v17 = vld [vmem:[%s923_s20 + $0xb0] sm:$0xff] }
  0x14   : > { %803 = vmatpush3.bf16.msra.mxu0 %v802_v7  ;;  %v808_v14 = vpack.c.bf16 %v284_v12, %v283_v11  ;;  %v268_v16 = vld [vmem:[%s923_s20 + $0x28] sm:$0xff]  ;;  %v286_v18 = vld [vmem:[%s923_s20 + $0xb8] sm:$0xff]  ;;  %v269_v21 = vld [vmem:[%s923_s20 + $0x30] sm:$0xff] }
  0x15   : > { %805 = vmatprep.subr.bf16.mxu0 %v804_v8  ;;  %v810_v19 = vpack.c.bf16 %v268_v16, %v267_v15  ;;  %v812_v20 = vpack.c.bf16 %v286_v18, %v285_v17  ;;  %v270_v22 = vld [vmem:[%s923_s20 + $0x38] sm:$0xff]  ;;  %v287_v23 = vld [vmem:[%s923_s20 + $0xc0] sm:$0xff]  ;;  %v288_v24 = vld [vmem:[%s923_s20 + $0xc8] sm:$0xff] }
  0x16   : > { %v248_v25 = vld [vmem:[%s943_s24 + $0x8] sm:$0xff]  ;;  %v814_v26 = vpack.c.bf16 %v270_v22, %v269_v21  ;;  %v816_v27 = vpack.c.bf16 %v288_v24, %v287_v23  ;;  %v271_v28 = vld [vmem:[%s923_s20 + $0x40] sm:$0xff]  ;;  %v289_v30 = vld [vmem:[%s923_s20 + $0xd0] sm:$0xff] }
  0x17   : > { %366 = vmatprep.mubr.f32.mxu0 %v248_v25  ;;  %v272_v29 = vld [vmem:[%s923_s20 + $0x48] sm:$0xff]  ;;  %v290_v31 = vld [vmem:[%s923_s20 + $0xd8] sm:$0xff]  ;;  %v273_v34 = vld [vmem:[%s923_s20 + $0x50] sm:$0xff] }
  0x18   : > { %807 = vmatpush3.bf16.msra.mxu0 %v806_v13  ;;  %v818_v32 = vpack.c.bf16 %v272_v29, %v271_v28  ;;  %v820_v33 = vpack.c.bf16 %v290_v31, %v289_v30  ;;  %v274_v35 = vld [vmem:[%s923_s20 + $0x58] sm:$0xff]  ;;  %v291_v36 = vld [vmem:[%s923_s20 + $0xe0] sm:$0xff]  ;;  %v292_v37 = vld [vmem:[%s923_s20 + $0xe8] sm:$0xff] }
  0x19   : > { %809 = vmatprep.subr.bf16.mxu0 %v808_v14  ;;  %v822_v38 = vpack.c.bf16 %v274_v35, %v273_v34  ;;  %v824_v39 = vpack.c.bf16 %v292_v37, %v291_v36  ;;  %v275_v40 = vld [vmem:[%s923_s20 + $0x60] sm:$0xff]  ;;  %v276_v41 = vld [vmem:[%s923_s20 + $0x68] sm:$0xff]  ;;  %v293_v42 = vld [vmem:[%s923_s20 + $0xf0] sm:$0xff] }
  0x1a   : > { %v294_v43 = vld [vmem:[%s923_s20 + $0xf8] sm:$0xff]  ;;  %v826_v44 = vpack.c.bf16 %v276_v41, %v275_v40  ;;  %v277_v46 = vld [vmem:[%s923_s20 + $0x70] sm:$0xff]  ;;  %v247_v49 = vld [vmem:[%s943_s24] sm:$0xff] }
  0x1b   : > { %v828_v45 = vpack.c.bf16 %v294_v43, %v293_v42  ;;  %v278_v47 = vld [vmem:[%s923_s20 + $0x78] sm:$0xff]  ;;  %v249_v51 = vld [vmem:[%s943_s24 + $0x10] sm:$0xff]  ;;  %v252_v52 = vld [vmem:[%s943_s24 + $0x28] sm:$0xff] }
  0x1c   : > { %811 = vmatpush3.bf16.msra.mxu0 %v810_v19  ;;  %v830_v48 = vpack.c.bf16 %v278_v47, %v277_v46  ;;  %v250_v50 = vld [vmem:[%s943_s24 + $0x18] sm:$0xff]  ;;  %v251_v53 = vld [vmem:[%s943_s24 + $0x20] sm:$0xff]  ;;  %v253_v55 = vld [vmem:[%s943_s24 + $0x30] sm:$0xff] }
  0x1d   : > { %813 = vmatprep.subr.bf16.mxu0 %v812_v20  ;;  %v254_v54 = vld [vmem:[%s943_s24 + $0x38] sm:$0xff]  ;;  %v256_v56 = vld [vmem:[%s943_s24 + $0x48] sm:$0xff]  ;;  %v255_v57 = vld [vmem:[%s943_s24 + $0x40] sm:$0xff] }
  0x1e   : > { %v258_v58 = vld [vmem:[%s943_s24 + $0x58] sm:$0xff]  ;;  %v257_v59 = vld [vmem:[%s943_s24 + $0x50] sm:$0xff]  ;;  %v260_v60 = vld [vmem:[%s943_s24 + $0x68] sm:$0xff] }
  0x1f   : > { %v259_v61 = vld [vmem:[%s943_s24 + $0x60] sm:$0xff]  ;;  %v262_v62 = vld [vmem:[%s943_s24 + $0x78] sm:$0xff]  ;;  %v261_v63 = vld [vmem:[%s943_s24 + $0x70] sm:$0xff] }
  0x20   : > { %815 = vmatpush3.bf16.msra.mxu0 %v814_v26  ;;  %v658_v5 = vld [vmem:[%s238_s27] ss:$0 sm:$0xff] }
  0x21   : > { %817 = vmatprep.subr.bf16.mxu0 %v816_v27  ;;  %v415_v47 = vld [vmem:[%s242_s5] sm:$0xff] }
  0x24   : > { %819 = vmatpush3.bf16.msra.mxu0 %v818_v32 }
  0x25   : > { %821 = vmatprep.subr.bf16.mxu0 %v820_v33 }
  0x28   : > { %823 = vmatpush3.bf16.msra.mxu0 %v822_v38 }
  0x29   : > { %825 = vmatprep.subr.bf16.mxu0 %v824_v39 }
  0x2c   : > { %827 = vmatpush3.bf16.msra.mxu0 %v826_v44 }
  0x2d   : > { %829 = vmatprep.subr.bf16.mxu0 %v828_v45 }
  0x30   : > { %831 = vmatpush3.bf16.msra.mxu0 %v830_v48  ;;  %v883_v48 = vmov 1.0|1.0  }
  0x33   : > { %367 = vmatmul.mubr.f32.vlgmr.msra.gmra.mrb[0].mxu0 %v247_v49 }
  0x34   : > { %371 = vmatprep.mubr.f32.mxu0 %v250_v50 }
  0x37   : > { %372 = vmatmul.mubr.f32.gmra.mrb[2].mxu0 %v249_v51 }
  0x38   : > { %376 = vmatprep.mubr.f32.mxu0 %v252_v52 }
  0x3b   : > { %377 = vmatmul.mubr.f32.gmra.mrb[4].mxu0 %v251_v53 }
  0x3c   : > { %381 = vmatprep.mubr.f32.mxu0 %v254_v54 }
  0x3f   : > { %382 = vmatmul.mubr.f32.gmra.mrb[6].mxu0 %v253_v55 }
  0x40   : > { %386 = vmatprep.mubr.f32.mxu0 %v256_v56 }
  0x43   : > { %387 = vmatmul.mubr.f32.gmra.mrb[8].mxu0 %v255_v57 }
  0x44   : > { %391 = vmatprep.mubr.f32.mxu0 %v258_v58 }
  0x47   : > { %392 = vmatmul.mubr.f32.gmra.mrb[10].mxu0 %v257_v59 }
  0x48   : > { %396 = vmatprep.mubr.f32.mxu0 %v260_v60 }
  0x4b   : > { %397 = vmatmul.mubr.f32.gmra.mrb[12].mxu0 %v259_v61 }
  0x4c   : > { %401 = vmatprep.mubr.f32.mxu0 %v262_v62 }
  0x4f   : > { %402 = vmatmul.mubr.f32.gmra.mrb[14].mxu0 %v261_v63 }
 0x106   : > { %v696_v2 = vpop.f32.mrb[0].mxu0 }
 0x107   : > { %v697_v3 = vpop.f32.mrb[1].mxu0 }
 0x108   : > { %v698_v4 = vadd.f32 %v697_v3, %v696_v2 }
 0x10a   : > { %v699_v6 = vpop.f32.mrb[2].mxu0  ;;  %v369_v8 = vadd.f32 %v698_v4, %v658_v5 }
 0x10b   : > { %v700_v7 = vpop.f32.mrb[3].mxu0 }
 0x10c   : > { %v701_v9 = vadd.f32 %v700_v7, %v699_v6  ;;  %v407_v13 = vmax.f32 %v369_v8, 0.0 }
 0x10e   : > { %v374_v10 = vadd.f32 %v701_v9, %v658_v5  ;;  %v702_v11 = vpop.f32.mrb[4].mxu0 }
 0x10f   : > { %v703_v12 = vpop.f32.mrb[5].mxu0 }
 0x110   : > { %v408_v14 = vmax.f32 %v374_v10, 0.0  ;;  %v704_v15 = vadd.f32 %v703_v12, %v702_v11 }
 0x112   : > { %v705_v16 = vpop.f32.mrb[6].mxu0  ;;  %v833_v17 = vpack.c.bf16 %v408_v14, %v407_v13  ;;  %v379_v19 = vadd.f32 %v704_v15, %v658_v5 }
 0x113   : > { %v706_v18 = vpop.f32.mrb[7].mxu0 }
 0x114   : > { %v707_v20 = vadd.f32 %v706_v18, %v705_v16  ;;  %834 = vmatpush3.bf16.msra.mxu1 %v833_v17  ;;  %v409_v24 = vmax.f32 %v379_v19, 0.0 }
 0x115   : > { %835 = vmatprep.subr.bf16.mxu1 %v880_v0 }
 0x116   : > { %v384_v21 = vadd.f32 %v707_v20, %v658_v5  ;;  %v708_v22 = vpop.f32.mrb[8].mxu0 }
 0x117   : > { %v709_v23 = vpop.f32.mrb[9].mxu0 }
 0x118   : > { %v410_v25 = vmax.f32 %v384_v21, 0.0  ;;  %v710_v26 = vadd.f32 %v709_v23, %v708_v22 }
 0x11a   : > { %v711_v27 = vpop.f32.mrb[10].mxu0  ;;  %v836_v28 = vpack.c.bf16 %v410_v25, %v409_v24  ;;  %v389_v30 = vadd.f32 %v710_v26, %v658_v5 }
 0x11b   : > { %v712_v29 = vpop.f32.mrb[11].mxu0 }
 0x11c   : > { %v713_v31 = vadd.f32 %v712_v29, %v711_v27  ;;  %837 = vmatpush3.bf16.msra.mxu1 %v836_v28  ;;  %v411_v35 = vmax.f32 %v389_v30, 0.0 }
 0x11d   : > { %838 = vmatprep.subr.bf16.mxu1 %v880_v0 }
 0x11e   : > { %v394_v32 = vadd.f32 %v713_v31, %v658_v5  ;;  %v714_v33 = vpop.f32.mrb[12].mxu0 }
 0x11f   : > { %v715_v34 = vpop.f32.mrb[13].mxu0 }
 0x120   : > { %v412_v36 = vmax.f32 %v394_v32, 0.0  ;;  %v716_v37 = vadd.f32 %v715_v34, %v714_v33 }
 0x122   : > { %v717_v38 = vpop.f32.mrb[14].mxu0  ;;  %v839_v39 = vpack.c.bf16 %v412_v36, %v411_v35  ;;  %v399_v41 = vadd.f32 %v716_v37, %v658_v5 }
 0x123   : > { %v718_v40 = vpop.f32.mrb[15].mxu0 }
 0x124   : > { %v719_v42 = vadd.f32 %v718_v40, %v717_v38  ;;  %840 = vmatpush3.bf16.msra.mxu1 %v839_v39  ;;  %v413_v44 = vmax.f32 %v399_v41, 0.0 }
 0x125   : > { %841 = vmatprep.subr.bf16.mxu1 %v880_v0 }
 0x126   : > { %v404_v43 = vadd.f32 %v719_v42, %v658_v5 }
 0x128   : > { %v414_v45 = vmax.f32 %v404_v43, 0.0 }
 0x12a   : > { %v842_v46 = vpack.c.bf16 %v414_v45, %v413_v44 }
 0x12c   : > { %843 = vmatpush3.bf16.msra.mxu1 %v842_v46 }
 0x12d   : > { %844 = vmatprep.subr.bf16.mxu1 %v880_v0 }
 0x12f   : > { %763 = vmatmul.mubr.msk.f32.vlgmr.msra.gmra.mrb[0].mxu1 %vm416_vm1, %v415_v47 }
 0x130   : > { %845 = vmatpush3.bf16.msra.mxu1 %v883_v48  ;;  %797 = vmatprep.mubr.msk.f32.mxu1 %vm881_vm0, %v882_v1 }
 0x131   : > { %846 = vmatprep.subr.bf16.mxu1 %v880_v0 }
 0x134   : > { %847 = vmatpush3.bf16.msra.mxu1 %v883_v48 }
 0x135   : > { %848 = vmatprep.subr.bf16.mxu1 %v880_v0 }
 0x138   : > { %849 = vmatpush3.bf16.msra.mxu1 %v883_v48 }
 0x139   : > { %850 = vmatprep.subr.bf16.mxu1 %v880_v0 }
 0x13c   : > { %851 = vmatpush3.bf16.msra.mxu1 %v883_v48 }
 0x13d   : > { %852 = vmatprep.subr.bf16.mxu1 %v880_v0 }
 0x140   : > { %853 = vmatpush3.bf16.msra.mxu1 %v883_v48 }
 0x141   : > { %854 = vmatprep.subr.bf16.mxu1 %v880_v0 }
 0x144   : > { %855 = vmatpush3.bf16.msra.mxu1 %v883_v48 }
 0x145   : > { %856 = vmatprep.subr.bf16.mxu1 %v880_v0 }
 0x148   : > { %857 = vmatpush3.bf16.msra.mxu1 %v883_v48 }
 0x149   : > { %858 = vmatprep.subr.bf16.mxu1 %v880_v0 }
 0x14c   : > { %859 = vmatpush3.bf16.msra.mxu1 %v883_v48 }
 0x202   : > { %v486_v49 = vpop.f32.mrb[0].mxu1 }
 0x203   : > { %v764_v50 = vpop.f32.mrb[1].mxu1  ;;  %798 = vmatmul.mubr.f32.vlgmr.msra.gmra.mrb[2].mxu1 %v486_v49 }
 0x2d6   : > { %v556_v51 = vpop.f32.mrb[2].mxu1 }
 0x2d7   : > { %560 = vst [vmem:[%s246_s8] sm:$0xff] %v556_v51  ;;  %v799_v52 = vpop.f32.mrb[3].mxu1 }
 0x2d8 PF: > { %s14_s15 = sadd.s32 1, %s878_s15  }
 0x2d9   : > { %p11_p4 = scmp.ge.s32.totalorder %s14_s15, 5  }
 0x2db   :  { %13 = sbr.rel (!%p11_p4) target bundleno = 1 (0x1), region = 75 }

</bundles_post_ra>
